<compile_context>
chip_gen: v7x
topology: tpu7x:2x2x1
jax: 0.10.0
libtpu: 0.0.40
codegen_flags: <defaults>
</compile_context>

<pallas_src>
import jax
import jax.numpy as jnp
from jax.experimental import pallas as pl
from jax.experimental.pallas import tpu as pltpu

EPS = 1e-5                       # nn.BatchNorm2d default
LANE = 128                       # TPU lane width
TILE_M = 128                     # rows per grid step (raise to 512-1024 at real ResNet sizes)
VMEM_LIMIT_BYTES = 32 * 1024 * 1024


def _round_up(x, m):
    return (x + m - 1) // m * m


def _compiler_params():
    return pltpu.CompilerParams(
        dimension_semantics=("parallel",),
        vmem_limit_bytes=VMEM_LIMIT_BYTES)


# --------------------------- Pallas kernels ---------------------------------

def _stats_rows(acc):
    """(8, C) f32 tile-partial: row 0 = per-channel sum, row 1 = sum of squares."""
    c = acc.shape[-1]
    s = jnp.sum(acc, axis=0, keepdims=True)
    ss = jnp.sum(acc * acc, axis=0, keepdims=True)
    row = jax.lax.broadcasted_iota(jnp.int32, (8, c), 0)
    return jnp.where(row == 0, s, jnp.where(row == 1, ss, 0.0))


def _conv_stats_kernel(p_ref, w_ref, y_ref, st_ref):
    """One M-tile: conv as a single deep-K matmul + BN partial stats."""
    acc = jnp.dot(p_ref[...], w_ref[...], preferred_element_type=jnp.float32)
    y_ref[...] = acc.astype(y_ref.dtype)
    st_ref[...] = _stats_rows(acc)


def _conv_dual_stats_kernel(p_ref, w_ref, ws_ref, y_ref, sc_ref, st_ref, sst_ref):
    """conv1 tile + fused 1x1-projection shortcut (shares the same patch tile)."""
    p = p_ref[...]
    acc = jnp.dot(p, w_ref[...], preferred_element_type=jnp.float32)
    y_ref[...] = acc.astype(y_ref.dtype)
    st_ref[...] = _stats_rows(acc)
    sc = jnp.dot(p, ws_ref[...], preferred_element_type=jnp.float32)
    sc_ref[...] = sc.astype(sc_ref.dtype)
    sst_ref[...] = _stats_rows(sc)


def _bn_relu_kernel(y_ref, scale_ref, shift_ref, o_ref):
    """Apply folded BN (scale/shift) + ReLU on one M-tile."""
    y = y_ref[...].astype(jnp.float32) * scale_ref[...] + shift_ref[...]
    o_ref[...] = jnp.maximum(y, 0.0).astype(o_ref.dtype)


def _bn_add_relu_kernel(y_ref, scale_ref, shift_ref,
                        r_ref, rscale_ref, rshift_ref, o_ref):
    """Apply BN2, shortcut-BN (or identity), residual add and final ReLU."""
    y = y_ref[...].astype(jnp.float32) * scale_ref[...] + shift_ref[...]
    r = r_ref[...].astype(jnp.float32) * rscale_ref[...] + rshift_ref[...]
    o_ref[...] = jnp.maximum(y + r, 0.0).astype(o_ref.dtype)


# ------------------------------ wrappers -------------------------------------

def _im2col(x_nhwc, ksize, stride, padding):
    """(M, k*k*Cin) bf16 patch matrix.  Pure layout glue done once per conv."""
    N, H, W, C = x_nhwc.shape
    Ho = (H + 2 * padding - ksize) // stride + 1
    Wo = (W + 2 * padding - ksize) // stride + 1
    xp = jnp.pad(x_nhwc, ((0, 0), (padding, padding), (padding, padding), (0, 0)))
    taps = []
    for dy in range(ksize):
        for dx in range(ksize):
            sl = xp[:, dy:dy + (Ho - 1) * stride + 1:stride,
                       dx:dx + (Wo - 1) * stride + 1:stride, :]
            taps.append(sl.reshape(N * Ho * Wo, C))
    return jnp.concatenate(taps, axis=1).astype(jnp.bfloat16), (N, Ho, Wo)


def _conv_pass(patches, w_mats, cout_pad):
    """Tiled conv-as-matmul over M tiles (phase A).

    patches: (M, K) bf16.  w_mats: list of (K, Cout) f32 weight matrices
    (1 = plain conv, 2 = conv + fused 1x1 projection shortcut).
    Returns bf16 conv outputs (M_pad, cout_pad), per-weight (sum, sumsq)
    f32 channel vectors (over the real M rows), and M_pad.
    """
    m, k = patches.shape
    k_pad = _round_up(k, LANE)
    m_pad = _round_up(m, TILE_M)
    n_tiles = m_pad // TILE_M
    patches = jnp.pad(patches, ((0, m_pad - m), (0, k_pad - k)))
    w_pad = tuple(
        jnp.pad(w.astype(jnp.bfloat16),
                ((0, k_pad - w.shape[0]), (0, cout_pad - w.shape[1])))
        for w in w_mats)
    n_w = len(w_pad)

    p_spec = pl.BlockSpec((TILE_M, k_pad), lambda i: (i, 0))
    w_spec = pl.BlockSpec((k_pad, cout_pad), lambda i: (0, 0))   # VMEM-resident
    y_spec = pl.BlockSpec((TILE_M, cout_pad), lambda i: (i, 0))
    st_spec = pl.BlockSpec((8, cout_pad), lambda i: (i, 0))

    kernel = _conv_stats_kernel if n_w == 1 else _conv_dual_stats_kernel
    out_shape = (tuple(jax.ShapeDtypeStruct((m_pad, cout_pad), jnp.bfloat16)
                       for _ in range(n_w))
                 + tuple(jax.ShapeDtypeStruct((n_tiles * 8, cout_pad), jnp.float32)
                         for _ in range(n_w)))
    out_specs = (y_spec,) * n_w + (st_spec,) * n_w

    res = pl.pallas_call(
        kernel,
        grid=(n_tiles,),
        in_specs=(p_spec,) + (w_spec,) * n_w,
        out_specs=out_specs,
        out_shape=out_shape,
        compiler_params=_compiler_params(),
    )(patches, *w_pad)

    ys = res[:n_w]
    stats = []
    for st in res[n_w:]:
        st = st.reshape(n_tiles, 8, cout_pad)
        stats.append((jnp.sum(st[:, 0, :], axis=0), jnp.sum(st[:, 1, :], axis=0)))
    return ys, stats, m_pad


def _bn_fold(stat, m_real, gamma, beta, cout_pad):
    """Fold training-mode BatchNorm (biased batch stats) into scale/shift.
    (Running-stat updates are not modeled; forward output only.)"""
    s, ss = stat
    mean = s / m_real
    var = jnp.maximum(ss / m_real - mean * mean, 0.0)
    inv = jax.lax.rsqrt(var + EPS)
    g = jnp.pad(gamma.astype(jnp.float32), (0, cout_pad - gamma.shape[0]))
    b = jnp.pad(beta.astype(jnp.float32), (0, cout_pad - beta.shape[0]))
    scale = g * inv
    shift = b - mean * scale
    return scale.reshape(1, cout_pad), shift.reshape(1, cout_pad)


def _bn_apply(y, scale, shift, out_dtype):
    m_pad, cpad = y.shape
    n_tiles = m_pad // TILE_M
    y_spec = pl.BlockSpec((TILE_M, cpad), lambda i: (i, 0))
    v_spec = pl.BlockSpec((1, cpad), lambda i: (0, 0))
    return pl.pallas_call(
        _bn_relu_kernel,
        grid=(n_tiles,),
        in_specs=(y_spec, v_spec, v_spec),
        out_specs=y_spec,
        out_shape=jax.ShapeDtypeStruct((m_pad, cpad), out_dtype),
        compiler_params=_compiler_params(),
    )(y, scale, shift)


def _bn_add_relu_apply(y, scale, shift, res, rscale, rshift, out_dtype):
    m_pad, cpad = y.shape
    n_tiles = m_pad // TILE_M
    y_spec = pl.BlockSpec((TILE_M, cpad), lambda i: (i, 0))
    v_spec = pl.BlockSpec((1, cpad), lambda i: (0, 0))
    return pl.pallas_call(
        _bn_add_relu_kernel,
        grid=(n_tiles,),
        in_specs=(y_spec, v_spec, v_spec, y_spec, v_spec, v_spec),
        out_specs=y_spec,
        out_shape=jax.ShapeDtypeStruct((m_pad, cpad), out_dtype),
        compiler_params=_compiler_params(),
    )(y, scale, shift, res, rscale, rshift)


def basic_block_forward(x_nchw, params, *, in_planes, planes, stride):
    """BasicBlock.forward: relu(bn2(conv2(relu(bn1(conv1(x))))) + shortcut(x))."""
    x = jnp.transpose(x_nchw, (0, 2, 3, 1)).astype(jnp.float32)   # NCHW -> NHWC
    cout_pad = _round_up(planes, LANE)
    has_proj = (stride != 1) or (in_planes != planes)

    # ---- conv1 (3x3, stride) + fused 1x1 projection shortcut (phase A) ----
    p1, (n, ho, wo) = _im2col(x, 3, stride, 1)          # (M, 9*Cin) bf16
    m_real = p1.shape[0]
    w1 = params["w1"].reshape(9 * in_planes, planes)
    w_mats = [w1]
    if has_proj:
        # Embed the 1x1 weights at the center-tap rows so the shortcut conv
        # reuses the exact same patch tile (one extra MXU matmul, no x re-read).
        ws = jnp.zeros((9 * in_planes, planes), jnp.float32)
        center = 4 * in_planes                          # tap (dy=1, dx=1)
        ws = ws.at[center:center + in_planes, :].set(
            params["ws"].reshape(in_planes, planes))
        w_mats.append(ws)
    ys1, stats1, m_pad = _conv_pass(p1, w_mats, cout_pad)
    scale1, shift1 = _bn_fold(stats1[0], m_real, params["g1"], params["b1"], cout_pad)

    # ---- bn1 + relu (phase B) ----
    out1 = _bn_apply(ys1[0], scale1, shift1, jnp.bfloat16)
    out1_img = out1[:m_real, :planes].reshape(n, ho, wo, planes)

    # ---- conv2 (3x3, stride 1) (phase A) ----
    p2, _ = _im2col(out1_img, 3, 1, 1)                  # (M, 9*planes) bf16
    ys2, stats2, m_pad2 = _conv_pass(
        p2, [params["w2"].reshape(9 * planes, planes)], cout_pad)
    scale2, shift2 = _bn_fold(stats2[0], m_real, params["g2"], params["b2"], cout_pad)

    # ---- shortcut scale/shift + residual tensor ----
    if has_proj:
        res = ys1[1]                                    # (m_pad, cout_pad) bf16
        rscale, rshift = _bn_fold(stats1[1], m_real,
                                  params["gs"], params["bs"], cout_pad)
    else:
        res = jnp.pad(x.reshape(m_real, in_planes),
                      ((0, m_pad2 - m_real), (0, cout_pad - in_planes)))
        rscale = jnp.pad(jnp.ones((planes,), jnp.float32),
                         (0, cout_pad - planes)).reshape(1, cout_pad)
        rshift = jnp.zeros((1, cout_pad), jnp.float32)

    # ---- bn2 + shortcut-bn + residual add + relu (fused final phase B) ----
    out = _bn_add_relu_apply(ys2[0], scale2, shift2, res, rscale, rshift, jnp.float32)
    out = out[:m_real, :planes].reshape(n, ho, wo, planes)
    return jnp.transpose(out, (0, 3, 1, 2))             # NHWC -> NCHW


# ------------------------ pure-JAX reference (for check) ---------------------

def _ref_conv(x_nhwc, w_hwio, stride, padding):
    return jax.lax.conv_general_dilated(
        x_nhwc, w_hwio, window_strides=(stride, stride),
        padding=[(padding, padding), (padding, padding)],
        dimension_numbers=("NHWC", "HWIO", "NHWC"))


def _ref_bn(y, gamma, beta):
    mean = y.mean(axis=(0, 1, 2), keepdims=True)
    var = ((y - mean) ** 2).mean(axis=(0, 1, 2), keepdims=True)
    return (y - mean) * jax.lax.rsqrt(var + EPS) * gamma + beta


def basic_block_reference(x_nchw, params, *, in_planes, planes, stride):
    x = jnp.transpose(x_nchw, (0, 2, 3, 1))
    out = jnp.maximum(_ref_bn(_ref_conv(x, params["w1"], stride, 1),
                              params["g1"], params["b1"]), 0.0)
    out = _ref_bn(_ref_conv(out, params["w2"], 1, 1), params["g2"], params["b2"])
    if stride != 1 or in_planes != planes:
        sc = _ref_bn(_ref_conv(x, params["ws"], stride, 0),
                     params["gs"], params["bs"])
    else:
        sc = x
    out = jnp.maximum(out + sc, 0.0)
    return jnp.transpose(out, (0, 3, 1, 2))


# --------------------------------- main ---------------------------------------

def _init_params(key, in_planes, planes, stride):
    ks = jax.random.split(key, 8)
    p = {
        # conv weights in HWIO layout (== PyTorch OIHW transposed (2,3,1,0))
        "w1": 0.1 * jax.random.normal(ks[0], (3, 3, in_planes, planes), jnp.float32),
        "w2": 0.1 * jax.random.normal(ks[1], (3, 3, planes, planes), jnp.float32),
        "g1": 1.0 + 0.1 * jax.random.normal(ks[2], (planes,), jnp.float32),
        "b1": 0.1 * jax.random.normal(ks[3], (planes,), jnp.float32),
        "g2": 1.0 + 0.1 * jax.random.normal(ks[4], (planes,), jnp.float32),
        "b2": 0.1 * jax.random.normal(ks[5], (planes,), jnp.float32),
    }
    if stride != 1 or in_planes != planes:
        p["ws"] = 0.1 * jax.random.normal(ks[6], (1, 1, in_planes, planes), jnp.float32)
        p["gs"] = jnp.ones((planes,), jnp.float32)
        p["bs"] = 0.1 * jax.random.normal(ks[7], (planes,), jnp.float32)
    return p


if __name__ == "__main__":
    key = jax.random.PRNGKey(0)
    N, H, W = 2, 16, 16
    # bf16 matmul operands / intermediates vs the f32 XLA reference -> relaxed tol.
    RTOL, ATOL = 5e-2, 5e-2

    # Case 1: downsampling block (stride=2, channel change -> conv shortcut)
    in_planes, planes, stride = 4, 8, 2
    kx, kp = jax.random.split(key)
    x = jax.random.normal(kx, (N, in_planes, H, W), jnp.float32)
    params = _init_params(kp, in_planes, planes, stride)
    out = basic_block_forward(x, params, in_planes=in_planes, planes=planes,
                              stride=stride)
    out = jax.block_until_ready(out)
    ref = basic_block_reference(x, params, in_planes=in_planes, planes=planes,
                                stride=stride)
    assert out.shape == (N, planes, H // stride, W // stride)
    assert jnp.allclose(out, ref, rtol=RTOL, atol=ATOL), "mismatch (strided block)"

    # Case 2: identity-shortcut block (stride=1, same channels)
    in_planes2 = planes2 = 4
    kx2, kp2 = jax.random.split(kp)
    x2 = jax.random.normal(kx2, (N, in_planes2, H, W), jnp.float32)
    params2 = _init_params(kp2, in_planes2, planes2, 1)
    out2 = basic_block_forward(x2, params2, in_planes=in_planes2, planes=planes2,
                               stride=1)
    out2 = jax.block_until_ready(out2)
    ref2 = basic_block_reference(x2, params2, in_planes=in_planes2,
                                 planes=planes2, stride=1)
    assert out2.shape == (N, planes2, H, W)
    assert jnp.allclose(out2, ref2, rtol=RTOL, atol=ATOL), "mismatch (identity block)"

    print("KERNEL_OK")
</pallas_src>

<mosaic_0001>
module attributes {stable_mosaic.version = 11 : i64} {
  func.func @_conv_dual_stats_kernel(%arg0: i32, %arg1: memref<128x128xbf16, #tpu.memory_space<vmem>>, %arg2: memref<128x128xbf16, #tpu.memory_space<vmem>>, %arg3: memref<128x128xbf16, #tpu.memory_space<vmem>>, %arg4: memref<128x128xbf16, #tpu.memory_space<vmem>>, %arg5: memref<128x128xbf16, #tpu.memory_space<vmem>>, %arg6: memref<8x128xf32, #tpu.memory_space<vmem>>, %arg7: memref<8x128xf32, #tpu.memory_space<vmem>>) attributes {dimension_semantics = [#tpu.dimension_semantics<parallel>], iteration_bounds = array<i64: 1>, scalar_prefetch = 0 : i64, scratch_operands = 0 : i64, tpu.core_type = #tpu.core_type<tc>, window_params = [{transform_indices = @transform_0, window_bounds = array<i64: 128, 128>}, {pipeline_mode = #tpu.pipeline_mode<synchronous>, transform_indices = @transform_1, window_bounds = array<i64: 128, 128>}, {pipeline_mode = #tpu.pipeline_mode<synchronous>, transform_indices = @transform_2, window_bounds = array<i64: 128, 128>}, {transform_indices = @transform_3, window_bounds = array<i64: 128, 128>}, {transform_indices = @transform_4, window_bounds = array<i64: 128, 128>}, {transform_indices = @transform_5, window_bounds = array<i64: 8, 128>}, {transform_indices = @transform_6, window_bounds = array<i64: 8, 128>}]} {
    %c0 = arith.constant 0 : index
    %c0_0 = arith.constant 0 : index
    %0 = vector.load %arg1[%c0, %c0_0] : memref<128x128xbf16, #tpu.memory_space<vmem>>, vector<128x128xbf16>
    %c0_1 = arith.constant 0 : index
    %c0_2 = arith.constant 0 : index
    %1 = vector.load %arg2[%c0_1, %c0_2] : memref<128x128xbf16, #tpu.memory_space<vmem>>, vector<128x128xbf16>
    %cst = arith.constant dense<0.000000e+00> : vector<128x128xf32>
    %2 = tpu.matmul %0, %1, %cst {dimension_numbers = #tpu.dot_dimension_numbers<[1], [0], [0], [1], [0, 0, 1, 1], [], []>} : vector<128x128xbf16>, vector<128x128xbf16>, vector<128x128xf32> -> vector<128x128xf32>
    %3 = arith.truncf %2 : vector<128x128xf32> to vector<128x128xbf16>
    %c0_3 = arith.constant 0 : index
    %c0_4 = arith.constant 0 : index
    %4 = vector.load %arg4[%c0_3, %c0_4] : memref<128x128xbf16, #tpu.memory_space<vmem>>, vector<128x128xbf16>
    tpu.vector_store %arg4[%c0_3, %c0_4], %3 {strides = array<i32>} : memref<128x128xbf16, #tpu.memory_space<vmem>>, vector<128x128xbf16>,
    %cst_5 = arith.constant dense<0.000000e+00> : vector<128xf32>
    %5 = vector.multi_reduction <add>, %2, %cst_5 [0] : vector<128x128xf32> to vector<128xf32>
    %6 = vector.shape_cast %5 : vector<128xf32> to vector<1x128xf32>
    %7 = arith.mulf %2, %2 : vector<128x128xf32>
    %cst_6 = arith.constant dense<0.000000e+00> : vector<128xf32>
    %8 = vector.multi_reduction <add>, %7, %cst_6 [0] : vector<128x128xf32> to vector<128xf32>
    %9 = vector.shape_cast %8 : vector<128xf32> to vector<1x128xf32>
    %10 = tpu.iota {dimensions = array<i32: 0>} : vector<8x128xi32>
    %c0_i32 = arith.constant 0 : i32
    %11 = vector.broadcast %c0_i32 : i32 to vector<8x128xi32>
    %12 = arith.cmpi eq, %10, %11 : vector<8x128xi32>
    %c1_i32 = arith.constant 1 : i32
    %13 = vector.broadcast %c1_i32 : i32 to vector<8x128xi32>
    %14 = arith.cmpi eq, %10, %13 : vector<8x128xi32>
    %cst_7 = arith.constant 0.000000e+00 : f32
    %15 = vector.shape_cast %9 : vector<1x128xf32> to vector<1x128xf32>
    %16 = vector.broadcast %15 : vector<1x128xf32> to vector<8x128xf32>
    %17 = vector.broadcast %cst_7 : f32 to vector<8x128xf32>
    %18 = arith.select %14, %16, %17 : vector<8x128xi1>, vector<8x128xf32>
    %19 = vector.shape_cast %6 : vector<1x128xf32> to vector<1x128xf32>
    %20 = vector.broadcast %19 : vector<1x128xf32> to vector<8x128xf32>
    %21 = arith.select %12, %20, %18 : vector<8x128xi1>, vector<8x128xf32>
    %c0_8 = arith.constant 0 : index
    %c0_9 = arith.constant 0 : index
    %22 = vector.load %arg6[%c0_8, %c0_9] : memref<8x128xf32, #tpu.memory_space<vmem>>, vector<8x128xf32>
    tpu.vector_store %arg6[%c0_8, %c0_9], %21 {strides = array<i32>} : memref<8x128xf32, #tpu.memory_space<vmem>>, vector<8x128xf32>,
    %c0_10 = arith.constant 0 : index
    %c0_11 = arith.constant 0 : index
    %23 = vector.load %arg3[%c0_10, %c0_11] : memref<128x128xbf16, #tpu.memory_space<vmem>>, vector<128x128xbf16>
    %cst_12 = arith.constant dense<0.000000e+00> : vector<128x128xf32>
    %24 = tpu.matmul %0, %23, %cst_12 {dimension_numbers = #tpu.dot_dimension_numbers<[1], [0], [0], [1], [0, 0, 1, 1], [], []>} : vector<128x128xbf16>, vector<128x128xbf16>, vector<128x128xf32> -> vector<128x128xf32>
    %25 = arith.truncf %24 : vector<128x128xf32> to vector<128x128xbf16>
    %c0_13 = arith.constant 0 : index
    %c0_14 = arith.constant 0 : index
    %26 = vector.load %arg5[%c0_13, %c0_14] : memref<128x128xbf16, #tpu.memory_space<vmem>>, vector<128x128xbf16>
    tpu.vector_store %arg5[%c0_13, %c0_14], %25 {strides = array<i32>} : memref<128x128xbf16, #tpu.memory_space<vmem>>, vector<128x128xbf16>,
    %cst_15 = arith.constant dense<0.000000e+00> : vector<128xf32>
    %27 = vector.multi_reduction <add>, %24, %cst_15 [0] : vector<128x128xf32> to vector<128xf32>
    %28 = vector.shape_cast %27 : vector<128xf32> to vector<1x128xf32>
    %29 = arith.mulf %24, %24 : vector<128x128xf32>
    %cst_16 = arith.constant dense<0.000000e+00> : vector<128xf32>
    %30 = vector.multi_reduction <add>, %29, %cst_16 [0] : vector<128x128xf32> to vector<128xf32>
    %31 = vector.shape_cast %30 : vector<128xf32> to vector<1x128xf32>
    %32 = tpu.iota {dimensions = array<i32: 0>} : vector<8x128xi32>
    %c0_i32_17 = arith.constant 0 : i32
    %33 = vector.broadcast %c0_i32_17 : i32 to vector<8x128xi32>
    %34 = arith.cmpi eq, %32, %33 : vector<8x128xi32>
    %c1_i32_18 = arith.constant 1 : i32
    %35 = vector.broadcast %c1_i32_18 : i32 to vector<8x128xi32>
    %36 = arith.cmpi eq, %32, %35 : vector<8x128xi32>
    %cst_19 = arith.constant 0.000000e+00 : f32
    %37 = vector.shape_cast %31 : vector<1x128xf32> to vector<1x128xf32>
    %38 = vector.broadcast %37 : vector<1x128xf32> to vector<8x128xf32>
    %39 = vector.broadcast %cst_19 : f32 to vector<8x128xf32>
    %40 = arith.select %36, %38, %39 : vector<8x128xi1>, vector<8x128xf32>
    %41 = vector.shape_cast %28 : vector<1x128xf32> to vector<1x128xf32>
    %42 = vector.broadcast %41 : vector<1x128xf32> to vector<8x128xf32>
    %43 = arith.select %34, %42, %40 : vector<8x128xi1>, vector<8x128xf32>
    %c0_20 = arith.constant 0 : index
    %c0_21 = arith.constant 0 : index
    %44 = vector.load %arg7[%c0_20, %c0_21] : memref<8x128xf32, #tpu.memory_space<vmem>>, vector<8x128xf32>
    tpu.vector_store %arg7[%c0_20, %c0_21], %43 {strides = array<i32>} : memref<8x128xf32, #tpu.memory_space<vmem>>, vector<8x128xf32>,
    return
  }
  func.func @transform_0(%arg0: i32) -> (i32, i32) {
    %c0_i32 = arith.constant 0 : i32
    %c0_i32_0 = arith.constant 0 : i32
    return %arg0, %c0_i32 : i32, i32
  }
  func.func @transform_1(%arg0: i32) -> (i32, i32) {
    %c0_i32 = arith.constant 0 : i32
    %c0_i32_0 = arith.constant 0 : i32
    %c0_i32_1 = arith.constant 0 : i32
    return %c0_i32, %c0_i32_0 : i32, i32
  }
  func.func @transform_2(%arg0: i32) -> (i32, i32) {
    %c0_i32 = arith.constant 0 : i32
    %c0_i32_0 = arith.constant 0 : i32
    %c0_i32_1 = arith.constant 0 : i32
    return %c0_i32, %c0_i32_0 : i32, i32
  }
  func.func @transform_3(%arg0: i32) -> (i32, i32) {
    %c0_i32 = arith.constant 0 : i32
    %c0_i32_0 = arith.constant 0 : i32
    return %arg0, %c0_i32 : i32, i32
  }
  func.func @transform_4(%arg0: i32) -> (i32, i32) {
    %c0_i32 = arith.constant 0 : i32
    %c0_i32_0 = arith.constant 0 : i32
    return %arg0, %c0_i32 : i32, i32
  }
  func.func @transform_5(%arg0: i32) -> (i32, i32) {
    %c0_i32 = arith.constant 0 : i32
    %c0_i32_0 = arith.constant 0 : i32
    return %arg0, %c0_i32 : i32, i32
  }
  func.func @transform_6(%arg0: i32) -> (i32, i32) {
    %c0_i32 = arith.constant 0 : i32
    %c0_i32_0 = arith.constant 0 : i32
    return %arg0, %c0_i32 : i32, i32
  }
}

</mosaic_0001>

<bundles_post_ra>
// kernel: tpu_custom_call.1
= control target key start
LH: loop header
LB: loop body
LE: loop exit
PB: predicated region body
PF: predicated region fallthrough
CT: control target
= control target key end

     0   :  { %12 = vsyncpa [#allocation3], 0  ;;  %s1448_s0 = inlined_call_operand.hbm [shape: bf16[128,128], index: 0, kind: input, shape index: {}]   ;;  %s1449_s1 = inlined_call_operand.hbm [shape: bf16[128,128], index: 1, kind: input, shape index: {}]   ;;  %s1450_s2 = inlined_call_operand.hbm [shape: bf16[128,128], index: 2, kind: input, shape index: {}]   ;;  %s1451_s3 = inlined_call_operand.hbm [shape: bf16[128,128], index: 3, kind: output, shape index: {0}]   ;;  %s1452_s4 = inlined_call_operand.hbm [shape: bf16[128,128], index: 4, kind: output, shape index: {1}]   ;;  %s1453_s5 = inlined_call_operand.hbm [shape: f32[8,128], index: 5, kind: output, shape index: {2}]   ;;  %s1454_s6 = inlined_call_operand.hbm [shape: f32[8,128], index: 6, kind: output, shape index: {3}]  }
   0x1   :  { %13 = vsyncpa [#allocation6], 0 }
   0x2   :  { %14 = vsyncpa [#allocation4], 0 }
   0x3   :  { %15 = vsyncpa [#allocation10], 0 }
   0x4   :  { %16 = vsyncpa [#allocation13], 0  ;;  %s1271_s21 = smov [#allocation5]   ;;  %s1272_s23 = smov [#allocation2]  }
   0x5   :  { %s34_s22 = sshll.u32 %s1271_s21, 4  ;;  %s22_s24 = sshll.u32 %s1272_s23, 4  ;;  %s35_s22 = int_to_ptr.vmem [resolvable:$true] %s34_s22  ;;  %s1315_s24 = int_to_ptr.vmem [resolvable:$true] %s22_s24 }
   0x6   :  { %s1107_s27 = scalar_lea.hbm %s1449_s1, 1024 }
   0x7   :  { %p1108_p0 = scmp.ne.s32.totalorder %s1449_s1, %s1107_s27  ;;  %p1111_p1 = scmp.lt.u32.totalorder %s1107_s27, %s1449_s1 }
   0x9   :  { %p1113_p2 = pnand %p1111_p1, %p1108_p0 }
   0xb   :  { %1116 = shalt.err (!%p1113_p2)
}
   0xc   :  { %s1117_s8 = scalar_lea.vmem %s35_s22, 1024  ;;  %p1122_p4 = scmp.lt.s32.totalorder %s35_s22, %s35_s22 }
   0xd   :  { %p1118_p3 = scmp.ne.s32.totalorder %s35_s22, %s1117_s8  ;;  %p1123_p5 = scmp.lt.s32.totalorder %s1117_s8, %s1117_s8 }
   0xf   :  { %p1124_p6 = por %p1123_p5, %p1122_p4 }
  0x11   :  { %p1125_p7 = pnand %p1124_p6, %p1118_p3 }
  0x13   :  { %1128 = shalt.err (!%p1125_p7)
}
  0x14   :  { %s1273_s9 = smov 64   ;;  %s1274_s10 = smov 4  }
  0x15   :  { %40 = dma.hbm_to_vmem [thread:$0]  %s1449_s1, 1024, %s35_s22, [#allocation6], %s1273_s9, %s1273_s9, %s1274_s10  }
  0x16   :  { %s1129_s15 = scalar_lea.hbm %s1448_s0, 1024 }
  0x17   :  { %p1130_p8 = scmp.ne.s32.totalorder %s1448_s0, %s1129_s15  ;;  %p1133_p9 = scmp.lt.u32.totalorder %s1129_s15, %s1448_s0 }
  0x19   :  { %p1135_p10 = pnand %p1133_p9, %p1130_p8 }
  0x1b   :  { %1138 = shalt.err (!%p1135_p10)
}
  0x1c   :  { %s1139_s20 = scalar_lea.vmem %s1315_s24, 1024  ;;  %p1144_p12 = scmp.lt.s32.totalorder %s1315_s24, %s1315_s24 }
  0x1d   :  { %p1140_p11 = scmp.ne.s32.totalorder %s1315_s24, %s1139_s20  ;;  %p1145_p13 = scmp.lt.s32.totalorder %s1139_s20, %s1139_s20 }
  0x1f   :  { %p1146_p0 = por %p1145_p13, %p1144_p12 }
  0x21   :  { %p1147_p1 = pnand %p1146_p0, %p1140_p11 }
  0x23   :  { %1150 = shalt.err (!%p1147_p1)
}
  0x24   :  { %28 = dma.hbm_to_vmem [thread:$0]  %s1448_s0, 1024, %s1315_s24, [#allocation3], %s1273_s9, %s1273_s9, %s1274_s10  }
  0x25   :  { %s1275_s22 = smov [#allocation7]   ;;  %s1151_s27 = scalar_lea.hbm %s1450_s2, 1024 }
  0x26   :  { %s46_s23 = sshll.u32 %s1275_s22, 4  ;;  %p1152_p2 = scmp.ne.s32.totalorder %s1450_s2, %s1151_s27  ;;  %s47_s23 = int_to_ptr.vmem [resolvable:$true] %s46_s23 }
  0x27   :  { %p1155_p3 = scmp.lt.u32.totalorder %s1151_s27, %s1450_s2 }
  0x29   :  { %p1157_p4 = pnand %p1155_p3, %p1152_p2 }
  0x2b   :  { %1160 = shalt.err (!%p1157_p4)
}
  0x2c   :  { %s1161_s8 = scalar_lea.vmem %s47_s23, 1024  ;;  %p1166_p6 = scmp.lt.s32.totalorder %s47_s23, %s47_s23 }
  0x2d   :  { %p1162_p5 = scmp.ne.s32.totalorder %s47_s23, %s1161_s8  ;;  %p1167_p7 = scmp.lt.s32.totalorder %s1161_s8, %s1161_s8 }
  0x2f   :  { %p1168_p8 = por %p1167_p7, %p1166_p6 }
  0x31   :  { %p1169_p9 = pnand %p1168_p8, %p1162_p5 }
  0x33   :  { %1172 = shalt.err (!%p1169_p9)
}
  0x34   :  { %52 = dma.hbm_to_vmem [thread:$0]  %s1450_s2, 1024, %s47_s23, [#allocation6], %s1273_s9, %s1273_s9, %s1274_s10  }
  0x35   :  { %1261 = dma.done.wait [#allocation3], 1024  }
  0x36   :  { %1262 = vsyncadd [#allocation3], 4294966272 }
  0x37   :  { %1263 = dma.done.wait [#allocation6], 2048  }
  0x38   :  { %1264 = vsyncadd [#allocation6], 4294965248  ;;  %v1083_v0 = vld [vmem:[#allocation5] sm:$0xff]   ;;  %v1085_v2 = vld [vmem:[#allocation5 + $0x8] sm:$0xff]   ;;  %s1276_s2 = smov [#allocation8]   ;;  %s1277_s12 = smov [#allocation9]  }
  0x39   :  { %v1084_v1 = vld [vmem:[#allocation7] sm:$0xff]   ;;  %1010 = vmatprep.subr.bf16.mxu0 %v1083_v0  ;;  %v1086_v3 = vld [vmem:[#allocation7 + $0x8] sm:$0xff]   ;;  %v1087_v4 = vld [vmem:[#allocation5 + $0x10] sm:$0xff]   ;;  %s740_s11 = sshll.u32 %s1276_s2, 4  ;;  %s752_s13 = sshll.u32 %s1277_s12, 4  ;;  %s1370_s11 = int_to_ptr.vmem [resolvable:$true] %s740_s11  ;;  %s1372_s13 = int_to_ptr.vmem [resolvable:$true] %s752_s13 }
  0x3a   :  { %1042 = vmatprep.subr.bf16.mxu1 %v1084_v1  ;;  %1011 = vmatpush3.bf16.msra.mxu0 %v1083_v0  ;;  %v1088_v5 = vld [vmem:[#allocation7 + $0x10] sm:$0xff]   ;;  %v1089_v6 = vld [vmem:[#allocation5 + $0x18] sm:$0xff]   ;;  %v1091_v8 = vld [vmem:[#allocation5 + $0x20] sm:$0xff]   ;;  %s1173_s14 = scalar_lea.vmem %s1370_s11, 1024  ;;  %p1178_p11 = scmp.lt.s32.totalorder %s1370_s11, %s1370_s11 }
  0x3b   :  { %1043 = vmatpush3.bf16.msra.mxu1 %v1084_v1  ;;  %1012 = vmatprep.subr.bf16.mxu0 %v1085_v2  ;;  %v1090_v7 = vld [vmem:[#allocation7 + $0x18] sm:$0xff]   ;;  %v1092_v9 = vld [vmem:[#allocation7 + $0x20] sm:$0xff]   ;;  %v1093_v10 = vld [vmem:[#allocation5 + $0x28] sm:$0xff]   ;;  %p1174_p10 = scmp.ne.s32.totalorder %s1370_s11, %s1173_s14  ;;  %p1179_p12 = scmp.lt.s32.totalorder %s1173_s14, %s1173_s14 }
  0x3c   :  { %1044 = vmatprep.subr.bf16.mxu1 %v1086_v3  ;;  %v1099_v11 = vld [vmem:[#allocation2] sm:$0xff]   ;;  %v1094_v12 = vld [vmem:[#allocation7 + $0x28] sm:$0xff]   ;;  %v1095_v13 = vld [vmem:[#allocation5 + $0x30] sm:$0xff]  }
  0x3d   :  { %1026 = vmatprep.mubr.bf16.mxu0 %v1099_v11  ;;  %1058 = vmatprep.mubr.bf16.mxu1 %v1099_v11  ;;  %v1096_v14 = vld [vmem:[#allocation7 + $0x30] sm:$0xff]   ;;  %v1097_v15 = vld [vmem:[#allocation5 + $0x38] sm:$0xff]   ;;  %v1100_v17 = vld [vmem:[#allocation2 + $0x8] sm:$0xff]   ;;  %p1180_p13 = por %p1179_p12, %p1178_p11 }
  0x3e   :  { %1013 = vmatpush3.bf16.msra.mxu0 %v1085_v2  ;;  %v1098_v16 = vld [vmem:[#allocation7 + $0x38] sm:$0xff]   ;;  %v1101_v18 = vld [vmem:[#allocation2 + $0x10] sm:$0xff]   ;;  %v1103_v20 = vld [vmem:[#allocation2 + $0x20] sm:$0xff]  }
  0x3f   :  { %1045 = vmatpush3.bf16.msra.mxu1 %v1086_v3  ;;  %1014 = vmatprep.subr.bf16.mxu0 %v1087_v4  ;;  %v1102_v19 = vld [vmem:[#allocation2 + $0x18] sm:$0xff]   ;;  %v1104_v21 = vld [vmem:[#allocation2 + $0x28] sm:$0xff]   ;;  %v1105_v22 = vld [vmem:[#allocation2 + $0x30] sm:$0xff]   ;;  %p1181_p0 = pnand %p1180_p13, %p1174_p10 }
  0x40   :  { %1046 = vmatprep.subr.bf16.mxu1 %v1088_v5  ;;  %v1106_v23 = vld [vmem:[#allocation2 + $0x38] sm:$0xff]  }
  0x42   :  { %1015 = vmatpush3.bf16.msra.mxu0 %v1087_v4 }
  0x43   :  { %1047 = vmatpush3.bf16.msra.mxu1 %v1088_v5  ;;  %1016 = vmatprep.subr.bf16.mxu0 %v1089_v6 }
  0x44   :  { %1048 = vmatprep.subr.bf16.mxu1 %v1090_v7 }
  0x46   :  { %1017 = vmatpush3.bf16.msra.mxu0 %v1089_v6 }
  0x47   :  { %1049 = vmatpush3.bf16.msra.mxu1 %v1090_v7  ;;  %1018 = vmatprep.subr.bf16.mxu0 %v1091_v8 }
  0x48   :  { %1050 = vmatprep.subr.bf16.mxu1 %v1092_v9 }
  0x4a   :  { %1019 = vmatpush3.bf16.msra.mxu0 %v1091_v8 }
  0x4b   :  { %1051 = vmatpush3.bf16.msra.mxu1 %v1092_v9  ;;  %1020 = vmatprep.subr.bf16.mxu0 %v1093_v10 }
  0x4c   :  { %1052 = vmatprep.subr.bf16.mxu1 %v1094_v12 }
  0x4e   :  { %1021 = vmatpush3.bf16.msra.mxu0 %v1093_v10 }
  0x4f   :  { %1053 = vmatpush3.bf16.msra.mxu1 %v1094_v12  ;;  %1022 = vmatprep.subr.bf16.mxu0 %v1095_v13 }
  0x50   :  { %1054 = vmatprep.subr.bf16.mxu1 %v1096_v14 }
  0x52   :  { %1023 = vmatpush3.bf16.msra.mxu0 %v1095_v13 }
  0x53   :  { %1055 = vmatpush3.bf16.msra.mxu1 %v1096_v14  ;;  %1024 = vmatprep.subr.bf16.mxu0 %v1097_v15 }
  0x54   :  { %1056 = vmatprep.subr.bf16.mxu1 %v1098_v16 }
  0x56   :  { %1025 = vmatpush3.bf16.msra.mxu0 %v1097_v15 }
  0x57   :  { %1057 = vmatpush3.bf16.msra.mxu1 %v1098_v16 }
  0x59   :  { %1027 = vmatmul.mubr.bf16.vlgmr.msra.gmra.mrb[0].mxu0 %v1100_v17 }
  0x5a   :  { %1059 = vmatmul.mubr.bf16.vlgmr.msra.gmra.mrb[0].mxu1 %v1100_v17  ;;  %1030 = vmatprep.mubr.bf16.mxu0 %v1101_v18 }
  0x5b   :  { %1062 = vmatprep.mubr.bf16.mxu1 %v1101_v18 }
  0x61   :  { %1031 = vmatmul.mubr.bf16.gmra.mrb[4].mxu0 %v1102_v19 }
  0x62   :  { %1063 = vmatmul.mubr.bf16.gmra.mrb[4].mxu1 %v1102_v19  ;;  %1034 = vmatprep.mubr.bf16.mxu0 %v1103_v20 }
  0x63   :  { %1066 = vmatprep.mubr.bf16.mxu1 %v1103_v20 }
  0x69   :  { %1035 = vmatmul.mubr.bf16.gmra.mrb[8].mxu0 %v1104_v21 }
  0x6a   :  { %1067 = vmatmul.mubr.bf16.gmra.mrb[8].mxu1 %v1104_v21  ;;  %1038 = vmatprep.mubr.bf16.mxu0 %v1105_v22 }
  0x6b   :  { %1070 = vmatprep.mubr.bf16.mxu1 %v1105_v22 }
  0x71   :  { %1039 = vmatmul.mubr.bf16.gmra.mrb[12].mxu0 %v1106_v23 }
  0x72   :  { %1071 = vmatmul.mubr.bf16.gmra.mrb[12].mxu1 %v1106_v23 }
 0x12c   :  { %v1028_v24 = vpop.f32.mrb[0].mxu0 }
 0x12d   :  { %v1060_v25 = vpop.f32.mrb[0].mxu1  ;;  %v225_v26 = vpop.f32.mrb[1].mxu0  ;;  %v391_v42 = vmul.f32 %v1028_v24, %v1028_v24 }
 0x12e   :  { %v531_v27 = vpop.f32.mrb[1].mxu1  ;;  %v1029_v28 = vpop.f32.mrb[2].mxu0  ;;  %v389_v29 = vmul.f32 %v225_v26, %v225_v26  ;;  %v697_v44 = vmul.f32 %v1060_v25, %v1060_v25 }
 0x12f   :  { %v892_v30 = vpack.c.bf16 %v1029_v28, %v1028_v24  ;;  %v1061_v31 = vpop.f32.mrb[2].mxu1  ;;  %v228_v32 = vpop.f32.mrb[3].mxu0  ;;  %v695_v33 = vmul.f32 %v531_v27, %v531_v27  ;;  %v392_v48 = vmul.f32 %v1029_v28, %v1029_v28 }
 0x130   :  { %v932_v34 = vpack.c.bf16 %v1061_v31, %v1060_v25  ;;  %v887_v35 = vpack.c.bf16 %v228_v32, %v225_v26  ;;  %v368_v36 = vadd.f32 %v228_v32, %v225_v26  ;;  %v534_v37 = vpop.f32.mrb[3].mxu1  ;;  %v390_v38 = vmul.f32 %v228_v32, %v228_v32 }
 0x131   :  { %964 = vst [vmem:[#allocation8 + $0x8] sm:$0xff] %v892_v30   ;;  %v927_v39 = vpack.c.bf16 %v534_v37, %v531_v27  ;;  %v674_v40 = vadd.f32 %v534_v37, %v531_v27  ;;  %v696_v41 = vmul.f32 %v534_v37, %v534_v37  ;;  %v698_v51 = vmul.f32 %v1061_v31, %v1061_v31 }
 0x132   :  { %971 = vst [vmem:[#allocation9 + $0x8] sm:$0xff] %v932_v34   ;;  %888 = vst [vmem:[#allocation8] sm:$0xff] %v887_v35   ;;  %v369_v43 = vadd.f32 %v1028_v24, %v368_v36  ;;  %v405_v45 = vadd.f32 %v390_v38, %v389_v29 }
 0x133   :  { %928 = vst [vmem:[#allocation9] sm:$0xff] %v927_v39   ;;  %v675_v46 = vadd.f32 %v1060_v25, %v674_v40  ;;  %v711_v47 = vadd.f32 %v696_v41, %v695_v33 }
 0x134   :  { %v1032_v49 = vpop.f32.mrb[4].mxu0  ;;  %v370_v50 = vadd.f32 %v1029_v28, %v369_v43  ;;  %v406_v52 = vadd.f32 %v405_v45, %v391_v42 }
 0x135   :  { %v712_v53 = vadd.f32 %v711_v47, %v697_v44  ;;  %v1064_v54 = vpop.f32.mrb[4].mxu1  ;;  %v241_v55 = vpop.f32.mrb[5].mxu0  ;;  %v676_v56 = vadd.f32 %v1061_v31, %v675_v46  ;;  %v395_v14 = vmul.f32 %v1032_v49, %v1032_v49 }
 0x136   :  { %v371_v57 = vadd.f32 %v370_v50, %v241_v55  ;;  %v393_v58 = vmul.f32 %v241_v55, %v241_v55  ;;  %v547_v59 = vpop.f32.mrb[5].mxu1  ;;  %v1033_v60 = vpop.f32.mrb[6].mxu0  ;;  %v407_v61 = vadd.f32 %v406_v52, %v392_v48  ;;  %v701_v16 = vmul.f32 %v1064_v54, %v1064_v54 }
 0x137   :  { %v677_v62 = vadd.f32 %v676_v56, %v547_v59  ;;  %v699_v63 = vmul.f32 %v547_v59, %v547_v59  ;;  %v713_v0 = vadd.f32 %v712_v53, %v698_v51  ;;  %v1065_v1 = vpop.f32.mrb[6].mxu1  ;;  %v244_v2 = vpop.f32.mrb[7].mxu0  ;;  %v902_v3 = vpack.c.bf16 %v1033_v60, %v1032_v49 }
 0x138   :  { %v942_v4 = vpack.c.bf16 %v1065_v1, %v1064_v54  ;;  %v550_v5 = vpop.f32.mrb[7].mxu1  ;;  %v408_v6 = vadd.f32 %v407_v61, %v393_v58  ;;  %v897_v8 = vpack.c.bf16 %v244_v2, %v241_v55  ;;  %v372_v9 = vadd.f32 %v371_v57, %v244_v2 }
 0x139   :  { %v714_v7 = vadd.f32 %v713_v0, %v699_v63  ;;  %966 = vst [vmem:[#allocation8 + $0x18] sm:$0xff] %v902_v3   ;;  %v394_v10 = vmul.f32 %v244_v2, %v244_v2  ;;  %v937_v11 = vpack.c.bf16 %v550_v5, %v547_v59  ;;  %v678_v12 = vadd.f32 %v677_v62, %v550_v5 }
 0x13a   :  { %973 = vst [vmem:[#allocation9 + $0x18] sm:$0xff] %v942_v4   ;;  %v700_v13 = vmul.f32 %v550_v5, %v550_v5  ;;  %965 = vst [vmem:[#allocation8 + $0x10] sm:$0xff] %v897_v8   ;;  %v373_v15 = vadd.f32 %v1032_v49, %v372_v9  ;;  %v396_v21 = vmul.f32 %v1033_v60, %v1033_v60 }
 0x13b   :  { %v409_v17 = vadd.f32 %v408_v6, %v394_v10  ;;  %972 = vst [vmem:[#allocation9 + $0x10] sm:$0xff] %v937_v11   ;;  %v679_v18 = vadd.f32 %v1064_v54, %v678_v12  ;;  %v702_v25 = vmul.f32 %v1065_v1, %v1065_v1 }
 0x13c   :  { %v715_v19 = vadd.f32 %v714_v7, %v700_v13  ;;  %v1036_v20 = vpop.f32.mrb[8].mxu0  ;;  %v374_v24 = vadd.f32 %v1033_v60, %v373_v15 }
 0x13d   :  { %v1068_v22 = vpop.f32.mrb[8].mxu1  ;;  %v257_v23 = vpop.f32.mrb[9].mxu0  ;;  %v410_v26 = vadd.f32 %v409_v17, %v395_v14  ;;  %v680_v32 = vadd.f32 %v1065_v1, %v679_v18  ;;  %v399_v51 = vmul.f32 %v1036_v20, %v1036_v20 }
 0x13e   :  { %v716_v27 = vadd.f32 %v715_v19, %v701_v16  ;;  %v397_v28 = vmul.f32 %v257_v23, %v257_v23  ;;  %v563_v29 = vpop.f32.mrb[9].mxu1  ;;  %v1037_v30 = vpop.f32.mrb[10].mxu0  ;;  %v375_v31 = vadd.f32 %v374_v24, %v257_v23  ;;  %v705_v54 = vmul.f32 %v1068_v22, %v1068_v22 }
 0x13f   :  { %v703_v33 = vmul.f32 %v563_v29, %v563_v29  ;;  %v912_v34 = vpack.c.bf16 %v1037_v30, %v1036_v20  ;;  %v1069_v35 = vpop.f32.mrb[10].mxu1  ;;  %v260_v36 = vpop.f32.mrb[11].mxu0  ;;  %v411_v37 = vadd.f32 %v410_v26, %v396_v21  ;;  %v681_v41 = vadd.f32 %v680_v32, %v563_v29 }
 0x140   :  { %v717_v38 = vadd.f32 %v716_v27, %v702_v25  ;;  %v952_v39 = vpack.c.bf16 %v1069_v35, %v1068_v22  ;;  %v566_v40 = vpop.f32.mrb[11].mxu1  ;;  %v907_v42 = vpack.c.bf16 %v260_v36, %v257_v23  ;;  %v376_v43 = vadd.f32 %v375_v31, %v260_v36 }
 0x141   :  { %968 = vst [vmem:[#allocation8 + $0x28] sm:$0xff] %v912_v34   ;;  %v412_v44 = vadd.f32 %v411_v37, %v397_v28  ;;  %v398_v46 = vmul.f32 %v260_v36, %v260_v36  ;;  %v947_v47 = vpack.c.bf16 %v566_v40, %v563_v29  ;;  %v682_v49 = vadd.f32 %v681_v41, %v566_v40 }
 0x142   :  { %v718_v45 = vadd.f32 %v717_v38, %v703_v33  ;;  %975 = vst [vmem:[#allocation9 + $0x28] sm:$0xff] %v952_v39   ;;  %967 = vst [vmem:[#allocation8 + $0x20] sm:$0xff] %v907_v42   ;;  %v377_v48 = vadd.f32 %v1036_v20, %v376_v43  ;;  %v704_v50 = vmul.f32 %v566_v40, %v566_v40 }
 0x143   :  { %v413_v52 = vadd.f32 %v412_v44, %v398_v46  ;;  %974 = vst [vmem:[#allocation9 + $0x20] sm:$0xff] %v947_v47   ;;  %v683_v55 = vadd.f32 %v1068_v22, %v682_v49  ;;  %v400_v60 = vmul.f32 %v1037_v30, %v1037_v30  ;;  %v706_v61 = vmul.f32 %v1069_v35, %v1069_v35 }
 0x144   :  { %v1040_v53 = vpop.f32.mrb[12].mxu0  ;;  %v719_v56 = vadd.f32 %v718_v45, %v704_v50  ;;  %v378_v59 = vadd.f32 %v1037_v30, %v377_v48 }
 0x145   :  { %v1072_v57 = vpop.f32.mrb[12].mxu1  ;;  %v273_v58 = vpop.f32.mrb[13].mxu0  ;;  %v414_v62 = vadd.f32 %v413_v52, %v399_v51  ;;  %v684_v4 = vadd.f32 %v1069_v35, %v683_v55  ;;  %v403_v22 = vmul.f32 %v1040_v53, %v1040_v53 }
 0x146   :  { %v401_v63 = vmul.f32 %v273_v58, %v273_v58  ;;  %v579_v0 = vpop.f32.mrb[13].mxu1  ;;  %v1367_v1 = vpop.f32.mrb[14].mxu0  ;;  %v720_v2 = vadd.f32 %v719_v56, %v705_v54  ;;  %v379_v3 = vadd.f32 %v378_v59, %v273_v58 }
 0x147   :  { %v707_v5 = vmul.f32 %v579_v0, %v579_v0  ;;  %v1073_v6 = vpop.f32.mrb[14].mxu1  ;;  %v276_v7 = vpop.f32.mrb[15].mxu0  ;;  %v415_v8 = vadd.f32 %v414_v62, %v400_v60  ;;  %v922_v9 = vpack.c.bf16 %v1367_v1, %v1040_v53  ;;  %v685_v12 = vadd.f32 %v684_v4, %v579_v0 }
 0x148   :  { %v962_v10 = vpack.c.bf16 %v1073_v6, %v1072_v57  ;;  %v582_v11 = vpop.f32.mrb[15].mxu1  ;;  %v721_v13 = vadd.f32 %v720_v2, %v706_v61  ;;  %v917_v14 = vpack.c.bf16 %v276_v7, %v273_v58  ;;  %v380_v16 = vadd.f32 %v379_v3, %v276_v7 }
 0x149   :  { %v416_v15 = vadd.f32 %v415_v8, %v401_v63  ;;  %970 = vst [vmem:[#allocation8 + $0x38] sm:$0xff] %v922_v9   ;;  %v402_v17 = vmul.f32 %v276_v7, %v276_v7  ;;  %v957_v18 = vpack.c.bf16 %v582_v11, %v579_v0  ;;  %v686_v20 = vadd.f32 %v685_v12, %v582_v11 }
 0x14a   :  { %977 = vst [vmem:[#allocation9 + $0x38] sm:$0xff] %v962_v10   ;;  %v722_v19 = vadd.f32 %v721_v13, %v707_v5  ;;  %969 = vst [vmem:[#allocation8 + $0x30] sm:$0xff] %v917_v14   ;;  %v708_v21 = vmul.f32 %v582_v11, %v582_v11  ;;  %v381_v23 = vadd.f32 %v1040_v53, %v380_v16 }
 0x14b   :  { %v417_v24 = vadd.f32 %v416_v15, %v402_v17  ;;  %976 = vst [vmem:[#allocation9 + $0x30] sm:$0xff] %v957_v18  }
 0x14c   :  { %1184 = shalt.err (!%p1181_p0)
}
 0x14d   :  { %s1185_s17 = scalar_lea.hbm %s1451_s3, 1024 }
 0x14e   :  { %p1186_p1 = scmp.ne.s32.totalorder %s1451_s3, %s1185_s17  ;;  %p1189_p2 = scmp.lt.u32.totalorder %s1185_s17, %s1451_s3 }
 0x150   :  { %p1191_p3 = pnand %p1189_p2, %p1186_p1 }
 0x152   :  { %1194 = shalt.err (!%p1191_p3)
}
 0x153   :  { %746 = dma.vmem_to_hbm [thread:$0]  %s1370_s11, 1024, %s1451_s3, [#allocation4], %s1273_s9, %s1273_s9, %s1274_s10   ;;  %v709_v25 = vmul.f32 %v1072_v57, %v1072_v57  ;;  %v687_v26 = vadd.f32 %v1072_v57, %v686_v20  ;;  %v723_v27 = vadd.f32 %v722_v19, %v708_v21 }
 0x154   :  { %s1195_s23 = scalar_lea.vmem %s1372_s13, 1024  ;;  %p1200_p5 = scmp.lt.s32.totalorder %s1372_s13, %s1372_s13 }
 0x155   :  { %p1196_p4 = scmp.ne.s32.totalorder %s1372_s13, %s1195_s23  ;;  %p1201_p6 = scmp.lt.s32.totalorder %s1195_s23, %s1195_s23 }
 0x157   :  { %p1202_p7 = por %p1201_p6, %p1200_p5 }
 0x159   :  { %p1203_p8 = pnand %p1202_p7, %p1196_p4 }
 0x15b   :  { %1206 = shalt.err (!%p1203_p8)
}
 0x15c   :  { %s1207_s27 = scalar_lea.hbm %s1452_s4, 1024 }
 0x15d   :  { %p1208_p9 = scmp.ne.s32.totalorder %s1452_s4, %s1207_s27  ;;  %p1211_p10 = scmp.lt.u32.totalorder %s1207_s27, %s1452_s4 }
 0x15f   :  { %p1213_p11 = pnand %p1211_p10, %p1208_p9 }
 0x161   :  { %1216 = shalt.err (!%p1213_p11)
}
 0x162   :  { %758 = dma.vmem_to_hbm [thread:$0]  %s1372_s13, 1024, %s1452_s4, [#allocation10], %s1273_s9, %s1273_s9, %s1274_s10   ;;  %v404_v28 = vmul.f32 %v1367_v1, %v1367_v1  ;;  %v382_v29 = vadd.f32 %v1367_v1, %v381_v23  ;;  %v418_v30 = vadd.f32 %v417_v24, %v403_v22  ;;  %v710_v31 = vmul.f32 %v1073_v6, %v1073_v6 }
 0x163   :  { %v688_v32 = vadd.f32 %v1073_v6, %v687_v26  ;;  %v724_v33 = vadd.f32 %v723_v27, %v709_v25  ;;  %v426_v42 = vlaneseq  ;;  %s1278_s4 = smov [#allocation11]   ;;  %s1279_s10 = smov [#allocation12]  }
 0x164   :  { %v383_v34 = vrot.slane %v382_v29, 4  ;;  %v419_v35 = vadd.f32 %v418_v30, %v404_v28  ;;  %s765_s9 = sshll.u32 %s1278_s4, 4  ;;  %s775_s0 = sshll.u32 %s1279_s10, 4  ;;  %s766_s9 = int_to_ptr.vmem [resolvable:$true] %s765_s9  ;;  %s1417_s0 = int_to_ptr.vmem [resolvable:$true] %s775_s0 }
 0x165   :  { %v689_v36 = vrot.slane %v688_v32, 4  ;;  %v725_v37 = vadd.f32 %v724_v33, %v710_v31  ;;  %v427_v49 = vshrl.u32 %v426_v42, 7  ;;  %s1217_s24 = scalar_lea.vmem %s766_s9, 128  ;;  %p1222_p13 = scmp.lt.s32.totalorder %s766_s9, %s766_s9 }
 0x166   :  { %v384_v38 = vadd.f32 %v383_v34, %v382_v29  ;;  %v420_v39 = vrot.slane %v419_v35, 4  ;;  %p1218_p12 = scmp.ne.s32.totalorder %s766_s9, %s1217_s24  ;;  %p1223_p0 = scmp.lt.s32.totalorder %s1217_s24, %s1217_s24 }
 0x167   :  { %v690_v40 = vadd.f32 %v689_v36, %v688_v32  ;;  %v726_v41 = vrot.slane %v725_v37, 4  ;;  %vm429_vm0 = vcmp.eq.s32.totalorder %v427_v49, 1  ;;  %vm428_vm1 = vcmp.eq.s32.totalorder %v427_v49, 0 }
 0x168   :  { %v385_v43 = vrot.slane %v384_v38, 2  ;;  %v421_v44 = vadd.f32 %v420_v39, %v419_v35  ;;  %p1224_p1 = por %p1223_p0, %p1222_p13 }
 0x169   :  { %v691_v45 = vrot.slane %v690_v40, 2  ;;  %v727_v46 = vadd.f32 %v726_v41, %v725_v37 }
 0x16a   :  { %v386_v47 = vadd.f32 %v385_v43, %v384_v38  ;;  %v422_v48 = vrot.slane %v421_v44, 2  ;;  %p1225_p2 = pnand %p1224_p1, %p1218_p12 }
 0x16b   :  { %v692_v50 = vadd.f32 %v691_v45, %v690_v40  ;;  %v728_v51 = vrot.slane %v727_v46, 2 }
 0x16c   :  { %v423_v52 = vadd.f32 %v422_v48, %v421_v44  ;;  %v387_v53 = vrot.slane %v386_v47, 1 }
 0x16d   :  { %v729_v54 = vadd.f32 %v728_v51, %v727_v46  ;;  %v693_v56 = vrot.slane %v692_v50, 1 }
 0x16e   :  { %v424_v55 = vrot.slane %v423_v52, 1  ;;  %v388_v59 = vadd.f32 %v387_v53, %v386_v47 }
 0x16f   :  { %v730_v57 = vrot.slane %v729_v54, 1  ;;  %v694_v62 = vadd.f32 %v693_v56, %v692_v50 }
 0x170   :  { %v425_v58 = vadd.f32 %v424_v55, %v423_v52 }
 0x171   :  { %v731_v60 = vadd.f32 %v730_v57, %v729_v54 }
 0x172   :  { %v430_v61 = vsel %vm429_vm0, %v425_v58, 0.0 }
 0x173   :  { %v431_v63 = vsel %vm428_vm1, %v388_v59, %v430_v61  ;;  %v732_v0 = vsel %vm429_vm0, %v731_v60, 0.0 }
 0x174   :  { %432 = vst [vmem:[#allocation11] sm:$0xff] %v431_v63  ;;  %v733_v1 = vsel %vm428_vm1, %v694_v62, %v732_v0 }
 0x175   :  { %1228 = shalt.err (!%p1225_p2)
}
 0x176   :  { %s1229_s12 = scalar_lea.hbm %s1453_s5, 128 }
 0x177   :  { %p1230_p3 = scmp.ne.s32.totalorder %s1453_s5, %s1229_s12  ;;  %p1233_p4 = scmp.lt.u32.totalorder %s1229_s12, %s1453_s5 }
 0x179   :  { %p1235_p5 = pnand %p1233_p4, %p1230_p3 }
 0x17b   :  { %1238 = shalt.err (!%p1235_p5)
}
 0x17c   :  { %768 = dma.vmem_to_hbm [thread:$0]  %s766_s9, 128, %s1453_s5, [#allocation10]   ;;  %734 = vst [vmem:[#allocation12] sm:$0xff] %v733_v1 }
 0x17d   :  { %s1239_s19 = scalar_lea.vmem %s1417_s0, 128  ;;  %p1244_p7 = scmp.lt.s32.totalorder %s1417_s0, %s1417_s0 }
 0x17e   :  { %p1240_p6 = scmp.ne.s32.totalorder %s1417_s0, %s1239_s19  ;;  %p1245_p8 = scmp.lt.s32.totalorder %s1239_s19, %s1239_s19 }
 0x180   :  { %p1246_p9 = por %p1245_p8, %p1244_p7 }
 0x182   :  { %p1247_p10 = pnand %p1246_p9, %p1240_p6 }
 0x184   :  { %1250 = shalt.err (!%p1247_p10)
}
 0x185   :  { %s1251_s21 = scalar_lea.hbm %s1454_s6, 128 }
 0x186   :  { %p1252_p11 = scmp.ne.s32.totalorder %s1454_s6, %s1251_s21  ;;  %p1255_p12 = scmp.lt.u32.totalorder %s1251_s21, %s1454_s6 }
 0x188   :  { %p1257_p13 = pnand %p1255_p12, %p1252_p11 }
 0x18a   :  { %1260 = shalt.err (!%p1257_p13)
}
 0x18b   :  { %778 = dma.vmem_to_hbm [thread:$0]  %s1417_s0, 128, %s1454_s6, [#allocation13]  }
 0x18c   :  { %1265 = dma.done.wait [#allocation4], 1024  }
 0x18d   :  { %1266 = vsyncadd [#allocation4], 4294966272 }
 0x18e   :  { %1267 = dma.done.wait [#allocation10], 1152  }
 0x18f   :  { %1268 = vsyncadd [#allocation10], 4294966144 }
 0x190   :  { %1269 = dma.done.wait [#allocation13], 128  }
 0x191   :  { %1270 = vsyncadd [#allocation13], 4294967168 }
 0x192   :  { %791 = vsyncpa [#allocation3], 1 }
 0x193   :  { %792 = vsyncpa [#allocation6], 1 }
 0x194   :  { %793 = vsyncpa [#allocation4], 1 }
 0x195   :  { %794 = vsyncpa [#allocation10], 1 }
 0x196   :  { %795 = vsyncpa [#allocation13], 1 }

</bundles_post_ra>
